<compile_context>
chip_gen: v6e
topology: v6e:2x2x1
jax: 0.10.0
libtpu: 0.0.40
codegen_flags: <defaults>
</compile_context>

<pallas_src>
import jax
import jax.numpy as jnp
from jax.experimental import pallas as pl
from jax.experimental.pallas import tpu as pltpu

DIM = 25       # matches `dim = 25` in the reference script
N_UNITS = 128  # matches `n_units = 128` in the reference script
ROW_ALIGN = 16 # batch-tile row alignment (safe for bf16 sublane packing)


def _round_up(n, m):
    return ((n + m - 1) // m) * m


def vcdnn_kernel(x_ref, w1_ref, b1_ref, w2_ref, b2_ref, w3_ref, b3_ref, o_ref):
    # Fused 3-layer MLP on one (bm, 25) batch tile:
    #   relu(x@W1+b1) -> relu(h1@W2+b2) -> h2@W3+b3
    # Matmuls run on the MXU with f32 accumulation; bias + ReLU stay f32 on
    # the VPU (so v5e's missing bf16 VPU path is irrelevant).
    cdt = w1_ref.dtype  # MXU input dtype (bf16 or f32)
    h1 = jnp.dot(x_ref[...], w1_ref[...], preferred_element_type=jnp.float32)
    h1 = jnp.maximum(h1 + b1_ref[...], 0.0).astype(cdt)
    h2 = jnp.dot(h1, w2_ref[...], preferred_element_type=jnp.float32)
    h2 = jnp.maximum(h2 + b2_ref[...], 0.0).astype(cdt)
    h3 = jnp.dot(h2, w3_ref[...], preferred_element_type=jnp.float32) + b3_ref[...]
    o_ref[...] = h3.astype(o_ref.dtype)


def prepare_params(params, compute_dtype=jnp.bfloat16):
    """One-time weight cast to the MXU compute dtype (hoisted out of the
    per-call wrapper).  Biases stay f32 (added after f32 accumulation).
    Weights are stored (in, out) for the x @ W convention and are NOT padded."""
    cdt = jnp.dtype(compute_dtype)
    return {
        "W1": params["W1"].astype(cdt), "b1": params["b1"].astype(jnp.float32),
        "W2": params["W2"].astype(cdt), "b2": params["b2"].astype(jnp.float32),
        "W3": params["W3"].astype(cdt), "b3": params["b3"].astype(jnp.float32),
    }


def vcdnn_forward(x, prepared, *, bm=1024):
    """x: (B, DIM) float32.  prepared: output of prepare_params()."""
    B, d = x.shape
    assert d == DIM
    w1, b1 = prepared["W1"], prepared["b1"]
    w2, b2 = prepared["W2"], prepared["b2"]
    w3, b3 = prepared["W3"], prepared["b3"]
    cdt = w1.dtype

    # --- Tile / grid selection ----------------------------------------------
    if B <= 256:
        n_steps = 1
    elif B <= 512:
        n_steps = 2              # two parallel tiles -> both v7x TensorCores busy
    else:
        n_steps = pl.cdiv(B, bm)  # ~bm rows per step, overhead amortized
    bm_eff = _round_up(pl.cdiv(B, n_steps), ROW_ALIGN)
    Bp = _round_up(B, bm_eff)     # batch padded to a multiple of the tile
    grid = (Bp // bm_eff,)

    # --- Batch padding + activation dtype cast (rows only; lanes stay at 25) --
    x_c = x.astype(cdt)
    if Bp != B:
        x_c = jnp.pad(x_c, ((0, Bp - B), (0, 0)))

    # Weights/biases use constant block indices -> resident in VMEM, no re-DMA
    # after the first grid step.  25-wide last dims are legal (== full array dim).
    in_specs = [
        pl.BlockSpec((bm_eff, DIM), lambda i: (i, 0)),       # x tile (bm, 25)
        pl.BlockSpec((DIM, N_UNITS), lambda i: (0, 0)),      # W1 (25, 128)
        pl.BlockSpec((1, N_UNITS), lambda i: (0, 0)),        # b1
        pl.BlockSpec((N_UNITS, N_UNITS), lambda i: (0, 0)),  # W2 (128, 128)
        pl.BlockSpec((1, N_UNITS), lambda i: (0, 0)),        # b2
        pl.BlockSpec((N_UNITS, DIM), lambda i: (0, 0)),      # W3 (128, 25)
        pl.BlockSpec((1, DIM), lambda i: (0, 0)),            # b3
    ]
    out_spec = pl.BlockSpec((bm_eff, DIM), lambda i: (i, 0))

    flops = 2 * Bp * (DIM * N_UNITS + N_UNITS * N_UNITS + N_UNITS * DIM)
    bytes_accessed = (
        Bp * DIM * cdt.itemsize                               # x read
        + Bp * DIM * 4                                        # f32 output write
        + (w1.size + w2.size + w3.size) * cdt.itemsize
        + (b1.size + b2.size + b3.size) * 4
    )

    out_padded = pl.pallas_call(
        vcdnn_kernel,
        out_shape=jax.ShapeDtypeStruct((Bp, DIM), jnp.float32),
        grid_spec=pltpu.PrefetchScalarGridSpec(
            num_scalar_prefetch=0,
            grid=grid,
            in_specs=in_specs,
            out_specs=out_spec,
        ),
        compiler_params=pltpu.CompilerParams(
            dimension_semantics=("parallel",)),
        cost_estimate=pl.CostEstimate(
            flops=flops, transcendentals=0, bytes_accessed=bytes_accessed),
    )(x_c, w1, b1, w2, b2, w3, b3)

    # Strip batch padding only (no lane padding anymore).
    return out_padded[:B] if Bp != B else out_padded


def init_params(key):
    """Deterministic init matching nn.Linear shapes:
       fc0: (DIM -> N_UNITS), fc1: (N_UNITS -> N_UNITS), fc2: (N_UNITS -> DIM).
       Stored transposed (in, out) for the x @ W convention."""
    ks = jax.random.split(key, 6)

    def linear(kw, kb, fan_in, fan_out):
        bound = 1.0 / jnp.sqrt(fan_in)
        w = jax.random.uniform(kw, (fan_in, fan_out), jnp.float32, -bound, bound)
        b = jax.random.uniform(kb, (1, fan_out), jnp.float32, -bound, bound)
        return w, b

    w1, b1 = linear(ks[0], ks[1], DIM, N_UNITS)
    w2, b2 = linear(ks[2], ks[3], N_UNITS, N_UNITS)
    w3, b3 = linear(ks[4], ks[5], N_UNITS, DIM)
    return {"W1": w1, "b1": b1, "W2": w2, "b2": b2, "W3": w3, "b3": b3}


def vcdnn_reference(x, p):
    h1 = jnp.maximum(x @ p["W1"] + p["b1"], 0.0)
    h2 = jnp.maximum(h1 @ p["W2"] + p["b2"], 0.0)
    return h2 @ p["W3"] + p["b3"]


if __name__ == "__main__":
    key = jax.random.PRNGKey(0)
    kp, kx = jax.random.split(key)
    params = init_params(kp)

    # One-time weight preparation (hoisted cast), both precisions for testing.
    prep_f32 = prepare_params(params, jnp.float32)
    prep_bf16 = prepare_params(params, jnp.bfloat16)

    # Small batch of feature frames, each of width DIM=25 (matches the module).
    B = 16
    x = jax.random.normal(kx, (B, DIM), jnp.float32)
    ref = vcdnn_reference(x, params)

    # f32 compute path: tight tolerance against the pure-JAX reference.
    out = jax.block_until_ready(vcdnn_forward(x, prep_f32))
    assert out.shape == (B, DIM)
    assert jnp.allclose(out, ref, atol=1e-4, rtol=1e-4), "f32 mismatch vs JAX reference"

    # bf16 MXU path (default recommendation): f32 accumulation, looser tolerance.
    out_bf16 = jax.block_until_ready(vcdnn_forward(x, prep_bf16))
    assert out_bf16.shape == (B, DIM)
    assert jnp.allclose(out_bf16, ref, atol=5e-2, rtol=5e-2), "bf16 mismatch vs JAX reference"

    # 256 < B <= 512 exercises the two-tile (v7x dual-TC) branch + batch padding.
    B2 = 300
    x2 = jax.random.normal(jax.random.PRNGKey(1), (B2, DIM), jnp.float32)
    out2 = jax.block_until_ready(vcdnn_forward(x2, prep_f32))
    assert out2.shape == (B2, DIM)
    assert jnp.allclose(out2, vcdnn_reference(x2, params), atol=1e-4, rtol=1e-4), \
        "two-tile batch mismatch vs JAX reference"

    # Non-multiple large batch exercises the multi-step grid path (bm=1024 tiles).
    B3 = 1100
    x3 = jax.random.normal(jax.random.PRNGKey(2), (B3, DIM), jnp.float32)
    out3 = jax.block_until_ready(vcdnn_forward(x3, prep_f32))
    assert out3.shape == (B3, DIM)
    assert jnp.allclose(out3, vcdnn_reference(x3, params), atol=1e-4, rtol=1e-4), \
        "large-batch mismatch vs JAX reference"

    print("KERNEL_OK")
</pallas_src>

<mosaic_0001>
module attributes {stable_mosaic.version = 11 : i64} {
  func.func @vcdnn_kernel(%arg0: i32, %arg1: memref<16x25xf32, #tpu.memory_space<vmem>>, %arg2: memref<25x128xf32, #tpu.memory_space<vmem>>, %arg3: memref<1x128xf32, #tpu.memory_space<vmem>>, %arg4: memref<128x128xf32, #tpu.memory_space<vmem>>, %arg5: memref<1x128xf32, #tpu.memory_space<vmem>>, %arg6: memref<128x25xf32, #tpu.memory_space<vmem>>, %arg7: memref<1x25xf32, #tpu.memory_space<vmem>>, %arg8: memref<16x25xf32, #tpu.memory_space<vmem>>) attributes {dimension_semantics = [#tpu.dimension_semantics<parallel>], iteration_bounds = array<i64: 1>, scalar_prefetch = 0 : i64, scratch_operands = 0 : i64, tpu.core_type = #tpu.core_type<tc>, window_params = [{transform_indices = @transform_0, window_bounds = array<i64: 16, 25>}, {pipeline_mode = #tpu.pipeline_mode<synchronous>, transform_indices = @transform_1, window_bounds = array<i64: 25, 128>}, {pipeline_mode = #tpu.pipeline_mode<synchronous>, transform_indices = @transform_2, window_bounds = array<i64: 1, 128>}, {pipeline_mode = #tpu.pipeline_mode<synchronous>, transform_indices = @transform_3, window_bounds = array<i64: 128, 128>}, {pipeline_mode = #tpu.pipeline_mode<synchronous>, transform_indices = @transform_4, window_bounds = array<i64: 1, 128>}, {pipeline_mode = #tpu.pipeline_mode<synchronous>, transform_indices = @transform_5, window_bounds = array<i64: 128, 25>}, {pipeline_mode = #tpu.pipeline_mode<synchronous>, transform_indices = @transform_6, window_bounds = array<i64: 1, 25>}, {transform_indices = @transform_7, window_bounds = array<i64: 16, 25>}]} {
    %c0 = arith.constant 0 : index
    %c0_0 = arith.constant 0 : index
    %0 = vector.load %arg1[%c0, %c0_0] : memref<16x25xf32, #tpu.memory_space<vmem>>, vector<16x25xf32>
    %c0_1 = arith.constant 0 : index
    %c0_2 = arith.constant 0 : index
    %1 = vector.load %arg2[%c0_1, %c0_2] : memref<25x128xf32, #tpu.memory_space<vmem>>, vector<25x128xf32>
    %cst = arith.constant dense<0.000000e+00> : vector<16x128xf32>
    %2 = tpu.matmul %0, %1, %cst {dimension_numbers = #tpu.dot_dimension_numbers<[1], [0], [0], [1], [0, 0, 1, 1], [], []>} : vector<16x25xf32>, vector<25x128xf32>, vector<16x128xf32> -> vector<16x128xf32>
    %c0_3 = arith.constant 0 : index
    %c0_4 = arith.constant 0 : index
    %3 = vector.load %arg3[%c0_3, %c0_4] : memref<1x128xf32, #tpu.memory_space<vmem>>, vector<1x128xf32>
    %4 = vector.broadcast %3 : vector<1x128xf32> to vector<16x128xf32>
    %5 = arith.addf %2, %4 : vector<16x128xf32>
    %cst_5 = arith.constant 0.000000e+00 : f32
    %6 = vector.broadcast %cst_5 : f32 to vector<16x128xf32>
    %7 = arith.maximumf %5, %6 : vector<16x128xf32>
    %c0_6 = arith.constant 0 : index
    %c0_7 = arith.constant 0 : index
    %8 = vector.load %arg4[%c0_6, %c0_7] : memref<128x128xf32, #tpu.memory_space<vmem>>, vector<128x128xf32>
    %cst_8 = arith.constant dense<0.000000e+00> : vector<16x128xf32>
    %9 = tpu.matmul %7, %8, %cst_8 {dimension_numbers = #tpu.dot_dimension_numbers<[1], [0], [0], [1], [0, 0, 1, 1], [], []>} : vector<16x128xf32>, vector<128x128xf32>, vector<16x128xf32> -> vector<16x128xf32>
    %c0_9 = arith.constant 0 : index
    %c0_10 = arith.constant 0 : index
    %10 = vector.load %arg5[%c0_9, %c0_10] : memref<1x128xf32, #tpu.memory_space<vmem>>, vector<1x128xf32>
    %11 = vector.broadcast %10 : vector<1x128xf32> to vector<16x128xf32>
    %12 = arith.addf %9, %11 : vector<16x128xf32>
    %cst_11 = arith.constant 0.000000e+00 : f32
    %13 = vector.broadcast %cst_11 : f32 to vector<16x128xf32>
    %14 = arith.maximumf %12, %13 : vector<16x128xf32>
    %c0_12 = arith.constant 0 : index
    %c0_13 = arith.constant 0 : index
    %15 = vector.load %arg6[%c0_12, %c0_13] : memref<128x25xf32, #tpu.memory_space<vmem>>, vector<128x25xf32>
    %cst_14 = arith.constant dense<0.000000e+00> : vector<16x25xf32>
    %16 = tpu.matmul %14, %15, %cst_14 {dimension_numbers = #tpu.dot_dimension_numbers<[1], [0], [0], [1], [0, 0, 1, 1], [], []>} : vector<16x128xf32>, vector<128x25xf32>, vector<16x25xf32> -> vector<16x25xf32>
    %c0_15 = arith.constant 0 : index
    %c0_16 = arith.constant 0 : index
    %17 = vector.load %arg7[%c0_15, %c0_16] : memref<1x25xf32, #tpu.memory_space<vmem>>, vector<1x25xf32>
    %18 = vector.broadcast %17 : vector<1x25xf32> to vector<16x25xf32>
    %19 = arith.addf %16, %18 : vector<16x25xf32>
    %c0_17 = arith.constant 0 : index
    %c0_18 = arith.constant 0 : index
    %20 = vector.load %arg8[%c0_17, %c0_18] : memref<16x25xf32, #tpu.memory_space<vmem>>, vector<16x25xf32>
    tpu.vector_store %arg8[%c0_17, %c0_18], %19 {strides = array<i32>} : memref<16x25xf32, #tpu.memory_space<vmem>>, vector<16x25xf32>,
    return
  }
  func.func @transform_0(%arg0: i32) -> (i32, i32) {
    %c0_i32 = arith.constant 0 : i32
    %c0_i32_0 = arith.constant 0 : i32
    return %arg0, %c0_i32 : i32, i32
  }
  func.func @transform_1(%arg0: i32) -> (i32, i32) {
    %c0_i32 = arith.constant 0 : i32
    %c0_i32_0 = arith.constant 0 : i32
    %c0_i32_1 = arith.constant 0 : i32
    return %c0_i32, %c0_i32_0 : i32, i32
  }
  func.func @transform_2(%arg0: i32) -> (i32, i32) {
    %c0_i32 = arith.constant 0 : i32
    %c0_i32_0 = arith.constant 0 : i32
    %c0_i32_1 = arith.constant 0 : i32
    return %c0_i32, %c0_i32_0 : i32, i32
  }
  func.func @transform_3(%arg0: i32) -> (i32, i32) {
    %c0_i32 = arith.constant 0 : i32
    %c0_i32_0 = arith.constant 0 : i32
    %c0_i32_1 = arith.constant 0 : i32
    return %c0_i32, %c0_i32_0 : i32, i32
  }
  func.func @transform_4(%arg0: i32) -> (i32, i32) {
    %c0_i32 = arith.constant 0 : i32
    %c0_i32_0 = arith.constant 0 : i32
    %c0_i32_1 = arith.constant 0 : i32
    return %c0_i32, %c0_i32_0 : i32, i32
  }
  func.func @transform_5(%arg0: i32) -> (i32, i32) {
    %c0_i32 = arith.constant 0 : i32
    %c0_i32_0 = arith.constant 0 : i32
    %c0_i32_1 = arith.constant 0 : i32
    return %c0_i32, %c0_i32_0 : i32, i32
  }
  func.func @transform_6(%arg0: i32) -> (i32, i32) {
    %c0_i32 = arith.constant 0 : i32
    %c0_i32_0 = arith.constant 0 : i32
    %c0_i32_1 = arith.constant 0 : i32
    return %c0_i32, %c0_i32_0 : i32, i32
  }
  func.func @transform_7(%arg0: i32) -> (i32, i32) {
    %c0_i32 = arith.constant 0 : i32
    %c0_i32_0 = arith.constant 0 : i32
    return %arg0, %c0_i32 : i32, i32
  }
}

</mosaic_0001>

<bundles_post_ra>
// kernel: tpu_custom_call.1
= control target key start
LH: loop header
LB: loop body
LE: loop exit
PB: predicated region body
PF: predicated region fallthrough
CT: control target
= control target key end

     0   :  { %12 = vsyncpa [#allocation3], 0  ;;  %s713_s0 = inlined_call_operand.hbm [shape: f32[16,25], index: 0, kind: input, shape index: {}]   ;;  %s714_s1 = inlined_call_operand.vmem [shape: f32[25,128], index: 1, kind: input, shape index: {}]   ;;  %s715_s2 = inlined_call_operand.vmem [shape: f32[1,128], index: 2, kind: input, shape index: {}]   ;;  %s716_s3 = inlined_call_operand.vmem [shape: f32[128,128], index: 3, kind: input, shape index: {}]   ;;  %s717_s4 = inlined_call_operand.vmem [shape: f32[1,128], index: 4, kind: input, shape index: {}]   ;;  %s718_s5 = inlined_call_operand.vmem [shape: f32[128,25], index: 5, kind: input, shape index: {}]   ;;  %s719_s6 = inlined_call_operand.vmem [shape: f32[1,25], index: 6, kind: input, shape index: {}]   ;;  %s720_s7 = inlined_call_operand.hbm [shape: f32[16,25], index: 7, kind: output, shape index: {}]  }
   0x1   :  { %13 = vsyncpa [#allocation4], 0  ;;  %s536_s24 = smov [#allocation2]  }
   0x2   :  { %s19_s25 = sshll.u32 %s536_s24, 4  ;;  %s20_s25 = int_to_ptr.vmem [resolvable:$true] %s19_s25 }
   0x3   :  { %s500_s26 = scalar_lea.vmem %s20_s25, 256  ;;  %p505_p1 = scmp.lt.s32.totalorder %s20_s25, %s20_s25 }
   0x4   :  { %p501_p0 = scmp.ne.s32.totalorder %s20_s25, %s500_s26  ;;  %p506_p2 = scmp.lt.s32.totalorder %s500_s26, %s500_s26 }
   0x6   :  { %p507_p3 = por %p506_p2, %p505_p1 }
   0x8   :  { %p508_p4 = pnand %p507_p3, %p501_p0 }
   0xa   :  { %511 = shalt.err (!%p508_p4)
}
   0xb   :  { %s537_s27 = smov 128   ;;  %s538_s28 = smov 8  }
   0xc   :  { %25 = dma.hbm_to_vmem [thread:$0]  %s713_s0, 256, %s20_s25, [#allocation3], %s537_s27, %s537_s27, %s538_s28  }
   0xd   :  { %532 = dma.done.wait [#allocation3], 256  }
   0xe   :  { %533 = vsyncadd [#allocation3], 4294967040  ;;  %vm61_vm0 = vcmask 1040384   ;;  %vm54_vm1 = vcmask 203776   ;;  %v46_v0 = vld [vmem:[%s714_s1 + $0x18] sm:$0x1] }
   0xf   :  { %v45_v1 = vld [vmem:[%s714_s1 + $0x10] sm:$0xff]  ;;  %407 = vmatprep.subr.msk.mxu0 %vm61_vm0, %v46_v0  ;;  %v41_v2 = vld [vmem:[#allocation2] sm:$0xff]  ;;  %v44_v3 = vld [vmem:[%s714_s1 + $0x8] sm:$0xff] }
  0x10   :  { %408 = vmatpush3.msk.msra.mxu0 %vm61_vm0, %v46_v0  ;;  %415 = vmatprep.mubr.msk.f32.mxu0 %vm54_vm1, %v41_v2  ;;  %v157_v4 = vld [vmem:[%s716_s3 + $0x78] sm:$0xff]  ;;  %v156_v5 = vld [vmem:[%s716_s3 + $0x70] sm:$0xff]  ;;  %v43_v6 = vld [vmem:[%s714_s1] sm:$0xff] }
  0x11   :  { %409 = vmatprep.subr.mxu0 %v45_v1  ;;  %418 = vmatprep.subr.mxu1 %v157_v4  ;;  %v155_v7 = vld [vmem:[%s716_s3 + $0x68] sm:$0xff]  ;;  %v154_v9 = vld [vmem:[%s716_s3 + $0x60] sm:$0xff]  ;;  %v153_v10 = vld [vmem:[%s716_s3 + $0x58] sm:$0xff] }
  0x12   :  { %410 = vmatpush3.msra.mxu0 %v45_v1  ;;  %419 = vmatpush3.msra.mxu1 %v157_v4  ;;  %v42_v8 = vld [vmem:[#allocation2 + $0x8] sm:$0xff]  ;;  %v152_v11 = vld [vmem:[%s716_s3 + $0x50] sm:$0xff]  ;;  %v150_v13 = vld [vmem:[%s716_s3 + $0x40] sm:$0xff] }
  0x13   :  { %411 = vmatprep.subr.mxu0 %v44_v3  ;;  %420 = vmatprep.subr.mxu1 %v156_v5  ;;  %v151_v12 = vld [vmem:[%s716_s3 + $0x48] sm:$0xff]  ;;  %v149_v14 = vld [vmem:[%s716_s3 + $0x38] sm:$0xff]  ;;  %v148_v15 = vld [vmem:[%s716_s3 + $0x30] sm:$0xff] }
  0x14   :  { %412 = vmatpush3.msra.mxu0 %v44_v3  ;;  %421 = vmatpush3.msra.mxu1 %v156_v5  ;;  %v147_v16 = vld [vmem:[%s716_s3 + $0x28] sm:$0xff]  ;;  %v146_v17 = vld [vmem:[%s716_s3 + $0x20] sm:$0xff]  ;;  %v145_v18 = vld [vmem:[%s716_s3 + $0x18] sm:$0xff] }
  0x15   :  { %413 = vmatprep.subr.mxu0 %v43_v6  ;;  %422 = vmatprep.subr.mxu1 %v155_v7  ;;  %v144_v19 = vld [vmem:[%s716_s3 + $0x10] sm:$0xff]  ;;  %v143_v20 = vld [vmem:[%s716_s3 + $0x8] sm:$0xff]  ;;  %v142_v21 = vld [vmem:[%s716_s3] sm:$0xff] }
  0x16   :  { %414 = vmatpush3.msra.mxu0 %v43_v6  ;;  %423 = vmatpush3.msra.mxu1 %v155_v7  ;;  %v257_v22 = vld [vmem:[%s718_s5 + $0x78] sm:$0xff]  ;;  %v256_v23 = vld [vmem:[%s718_s5 + $0x70] sm:$0xff]  ;;  %v255_v24 = vld [vmem:[%s718_s5 + $0x68] sm:$0xff] }
  0x17   :  { %416 = vmatmul.mubr.msk.f32.vlgmr.msra.gmra.mxu0 %vm54_vm1, %v42_v8  ;;  %424 = vmatprep.subr.mxu1 %v154_v9  ;;  %v254_v25 = vld [vmem:[%s718_s5 + $0x60] sm:$0xff]  ;;  %v253_v26 = vld [vmem:[%s718_s5 + $0x58] sm:$0xff]  ;;  %v252_v27 = vld [vmem:[%s718_s5 + $0x50] sm:$0xff] }
  0x18   :  { %425 = vmatpush3.msra.mxu1 %v154_v9  ;;  %453 = vmatprep.subr.mxu0 %v257_v22  ;;  %v251_v28 = vld [vmem:[%s718_s5 + $0x48] sm:$0xff]  ;;  %v250_v29 = vld [vmem:[%s718_s5 + $0x40] sm:$0xff]  ;;  %v249_v30 = vld [vmem:[%s718_s5 + $0x38] sm:$0xff] }
  0x19   :  { %426 = vmatprep.subr.mxu1 %v153_v10  ;;  %454 = vmatpush3.msra.mxu0 %v257_v22  ;;  %v248_v31 = vld [vmem:[%s718_s5 + $0x30] sm:$0xff]  ;;  %v247_v32 = vld [vmem:[%s718_s5 + $0x28] sm:$0xff]  ;;  %v246_v33 = vld [vmem:[%s718_s5 + $0x20] sm:$0xff] }
  0x1a   :  { %427 = vmatpush3.msra.mxu1 %v153_v10  ;;  %455 = vmatprep.subr.mxu0 %v256_v23  ;;  %v359_v34 = vld [vmem:[%s715_s2] ss:$0 sm:$0xff]  ;;  %v245_v41 = vld [vmem:[%s718_s5 + $0x18] sm:$0xff]  ;;  %v244_v42 = vld [vmem:[%s718_s5 + $0x10] sm:$0xff] }
  0x1b   :  { %428 = vmatprep.subr.mxu1 %v152_v11  ;;  %456 = vmatpush3.msra.mxu0 %v256_v23  ;;  %v243_v43 = vld [vmem:[%s718_s5 + $0x8] sm:$0xff]  ;;  %v242_v44 = vld [vmem:[%s718_s5] sm:$0xff]  ;;  %s539_s5 = smov [#allocation5]  }
  0x1c   :  { %429 = vmatpush3.msra.mxu1 %v152_v11  ;;  %457 = vmatprep.subr.mxu0 %v255_v24  ;;  %v363_v45 = vld [vmem:[%s717_s4] ss:$0 sm:$0xff]  ;;  %s347_s0 = sshll.u32 %s539_s5, 4  ;;  %s348_s0 = int_to_ptr.vmem [resolvable:$true] %s347_s0 }
  0x1d   :  { %430 = vmatprep.subr.mxu1 %v151_v12  ;;  %458 = vmatpush3.msra.mxu0 %v255_v24  ;;  %v364_v52 = vld [vmem:[%s719_s6] ss:$0 sm:$0xff]  ;;  %s512_s4 = scalar_lea.vmem %s348_s0, 256  ;;  %p517_p6 = scmp.lt.s32.totalorder %s348_s0, %s348_s0 }
  0x1e   :  { %431 = vmatpush3.msra.mxu1 %v151_v12  ;;  %459 = vmatprep.subr.mxu0 %v254_v25  ;;  %p513_p5 = scmp.ne.s32.totalorder %s348_s0, %s512_s4  ;;  %p518_p7 = scmp.lt.s32.totalorder %s512_s4, %s512_s4 }
  0x1f   :  { %432 = vmatprep.subr.mxu1 %v150_v13  ;;  %460 = vmatpush3.msra.mxu0 %v254_v25 }
  0x20   :  { %433 = vmatpush3.msra.mxu1 %v150_v13  ;;  %461 = vmatprep.subr.mxu0 %v253_v26  ;;  %p519_p8 = por %p518_p7, %p517_p6 }
  0x21   :  { %434 = vmatprep.subr.mxu1 %v149_v14  ;;  %462 = vmatpush3.msra.mxu0 %v253_v26 }
  0x22   :  { %435 = vmatpush3.msra.mxu1 %v149_v14  ;;  %463 = vmatprep.subr.mxu0 %v252_v27  ;;  %p520_p9 = pnand %p519_p8, %p513_p5 }
  0x23   :  { %436 = vmatprep.subr.mxu1 %v148_v15  ;;  %464 = vmatpush3.msra.mxu0 %v252_v27 }
  0x24   :  { %437 = vmatpush3.msra.mxu1 %v148_v15  ;;  %465 = vmatprep.subr.mxu0 %v251_v28 }
  0x25   :  { %438 = vmatprep.subr.mxu1 %v147_v16  ;;  %466 = vmatpush3.msra.mxu0 %v251_v28 }
  0x26   :  { %439 = vmatpush3.msra.mxu1 %v147_v16  ;;  %467 = vmatprep.subr.mxu0 %v250_v29 }
  0x27   :  { %440 = vmatprep.subr.mxu1 %v146_v17  ;;  %468 = vmatpush3.msra.mxu0 %v250_v29 }
  0x28   :  { %441 = vmatpush3.msra.mxu1 %v146_v17  ;;  %469 = vmatprep.subr.mxu0 %v249_v30 }
  0x29   :  { %442 = vmatprep.subr.mxu1 %v145_v18  ;;  %470 = vmatpush3.msra.mxu0 %v249_v30 }
  0x2a   :  { %443 = vmatpush3.msra.mxu1 %v145_v18  ;;  %471 = vmatprep.subr.mxu0 %v248_v31 }
  0x2b   :  { %444 = vmatprep.subr.mxu1 %v144_v19  ;;  %472 = vmatpush3.msra.mxu0 %v248_v31 }
  0x2c   :  { %445 = vmatpush3.msra.mxu1 %v144_v19  ;;  %473 = vmatprep.subr.mxu0 %v247_v32 }
  0x2d   :  { %446 = vmatprep.subr.mxu1 %v143_v20  ;;  %474 = vmatpush3.msra.mxu0 %v247_v32 }
  0x2e   :  { %447 = vmatpush3.msra.mxu1 %v143_v20  ;;  %475 = vmatprep.subr.mxu0 %v246_v33 }
  0x2f   :  { %448 = vmatprep.subr.mxu1 %v142_v21  ;;  %476 = vmatpush3.msra.mxu0 %v246_v33 }
  0x30   :  { %449 = vmatpush3.msra.mxu1 %v142_v21  ;;  %477 = vmatprep.subr.mxu0 %v245_v41 }
  0x31   :  { %478 = vmatpush3.msra.mxu0 %v245_v41 }
  0x32   :  { %479 = vmatprep.subr.mxu0 %v244_v42 }
  0x33   :  { %480 = vmatpush3.msra.mxu0 %v244_v42 }
  0x34   :  { %481 = vmatprep.subr.mxu0 %v243_v43 }
  0x35   :  { %482 = vmatpush3.msra.mxu0 %v243_v43 }
  0x36   :  { %483 = vmatprep.subr.mxu0 %v242_v44 }
  0x37   :  { %484 = vmatpush3.msra.mxu0 %v242_v44 }
  0xd7   :  { %v417_v35 = vpop.f32.mrf.mxu0 }
  0xd8   :  { %v137_v36 = vadd.f32 %v417_v35, %v359_v34 }
  0xd9   :  { %v131_v37 = vpop.f32.mrf.mxu0 }
  0xda   :  { %v132_v38 = vadd.f32 %v359_v34, %v131_v37  ;;  %v141_v40 = vmax.f32 %v137_v36, 0.0 }
  0xdc   :  { %v140_v39 = vmax.f32 %v132_v38, 0.0 }
  0xde   :  { %450 = vmatprep.mubr.f32.mxu1 %v140_v39 }
  0xdf   :  { %451 = vmatmul.mubr.f32.vlgmr.msra.gmra.mxu1 %v141_v40 }
 0x19f   :  { %v452_v46 = vpop.f32.mrf.mxu1 }
 0x1a0   :  { %v237_v47 = vadd.f32 %v452_v46, %v363_v45 }
 0x1a1   :  { %v231_v48 = vpop.f32.mrf.mxu1 }
 0x1a2   :  { %v232_v49 = vadd.f32 %v363_v45, %v231_v48  ;;  %v241_v51 = vmax.f32 %v237_v47, 0.0 }
 0x1a4   :  { %v240_v50 = vmax.f32 %v232_v49, 0.0 }
 0x1a6   :  { %485 = vmatprep.mubr.f32.mxu0 %v240_v50 }
 0x1a7   :  { %486 = vmatmul.mubr.f32.vlgmr.msra.gmra.mxu0 %v241_v51 }
 0x267   :  { %v487_v53 = vpop.f32.mrf.mxu0 }
 0x268   :  { %v337_v54 = vadd.f32 %v487_v53, %v364_v52 }
 0x269   :  { %v331_v55 = vpop.f32.mrf.mxu0 }
 0x26a   :  { %341 = vst.msk [vmem:[#allocation5 + $0x8] sm:$0xff] %vm54_vm1, %v337_v54  ;;  %v332_v56 = vadd.f32 %v364_v52, %v331_v55 }
 0x26c   :  { %340 = vst.msk [vmem:[#allocation5] sm:$0xff] %vm54_vm1, %v332_v56 }
 0x26d   :  { %523 = shalt.err (!%p520_p9)
}
 0x26e   :  { %353 = dma.vmem_to_hbm [thread:$0]  %s348_s0, 256, %s720_s7, [#allocation4], %s537_s27, %s537_s27, %s538_s28  }
 0x26f   :  { %534 = dma.done.wait [#allocation4], 256  }
 0x270   :  { %535 = vsyncadd [#allocation4], 4294967040 }
 0x271   :  { %357 = vsyncpa [#allocation3], 1 }
 0x272   :  { %358 = vsyncpa [#allocation4], 1 }

</bundles_post_ra>
